<compile_context>
chip_gen: v7x
topology: tpu7x:2x2x1
jax: 0.10.0
libtpu: 0.0.40
codegen_flags: <defaults>
</compile_context>

<pallas_src>
import numpy as np
import jax
import jax.numpy as jnp
from jax.experimental import pallas as pl
from jax.experimental.pallas import tpu as pltpu

ATOM_GRAPH_CUTOFF = 6.0
BOND_GRAPH_CUTOFF = 3.0
NUMERICAL_TOL = 1e-8

_TM_MAX = 256    # sublane tile (center atoms)
_TN_MAX = 8192   # lane tile (neighbor_flat); 256*8192*4B = 8 MiB/tile, 16 MiB dbl-buffered
_PAD_CART = 1e6  # padding sentinels -> padded pair d2 ~ 1.2e13 >> cutoff^2
_PAD_NBR = -1e6


def _round_up(x, m):
    return ((x + m - 1) // m) * m


def _pair_d2_kernel(cart_ref, nbr_t_ref, d2_ref):
    """d2[i, c] = || nbr_cart[:, c] - cart[i, :] ||^2  (pure VPU, lane-dense store)."""
    cart = cart_ref[...]        # [tm, 3]
    nbr = nbr_t_ref[...]        # [3, tn]
    # TODO(synk): if a bundle dump shows per-lane-block XLU rebroadcast of cart[:, k],
    # pre-broadcast the three cart columns to lane-dense inputs (v7x VALU micro-opt).
    dx = nbr[0:1, :] - cart[:, 0:1]
    dy = nbr[1:2, :] - cart[:, 1:2]
    dz = nbr[2:3, :] - cart[:, 2:3]
    acc = dx * dx
    acc = acc + dy * dy
    acc = acc + dz * dz
    d2_ref[...] = acc


def pair_squared_distances(frac, lattice, images):
    """Squared periodic all-pairs distances.

    Returns d2 [row_pad, col_pad] f32 (padded to (8,128) multiples); for the valid
    region, column index = neighbor_atom * n_images + image_index.  Padded rows /
    columns evaluate to ~1.2e13, far above any physical cutoff^2, so a cutoff mask
    on the padded array automatically excludes them.
    """
    frac = jnp.asarray(frac, jnp.float32)
    lattice = jnp.asarray(lattice, jnp.float32)
    images = jnp.asarray(images, jnp.float32)

    n_atoms = frac.shape[0]
    n_img = images.shape[0]
    nm = n_atoms * n_img

    # Coordinate transforms stay in XLA (tiny 3x3 matmuls, HIGHEST precision so
    # cutoff decisions near 6 A are not perturbed by reduced-precision MXU passes).
    cart = jnp.dot(frac, lattice, precision=jax.lax.Precision.HIGHEST)        # [N, 3]
    img_cart = jnp.dot(images, lattice, precision=jax.lax.Precision.HIGHEST)  # [M, 3]
    nbr_cart = cart[:, None, :] + img_cart[None, :, :]                        # [N, M, 3]
    nbr_cart_t = nbr_cart.reshape(nm, 3).T                                    # [3, N*M]

    # Pad only to (8, 128) alignment; ragged last blocks are handled by Pallas.
    row_pad = _round_up(n_atoms, 8)
    col_pad = _round_up(nm, 128)

    tm = min(_TM_MAX, row_pad)
    tn = min(_TN_MAX, col_pad)
    grid_rows = pl.cdiv(row_pad, tm)
    grid_cols = pl.cdiv(col_pad, tn)
    # v7x megacore: make sure there are >= 2 grid steps along a "parallel" axis
    # for small/medium structures, so the second TensorCore is not idle.
    if grid_rows == 1 and grid_cols == 1 and col_pad >= 256:
        tn = _round_up(col_pad // 2, 128)
        grid_cols = pl.cdiv(col_pad, tn)

    cart_pad = jnp.full((row_pad, 3), _PAD_CART, jnp.float32).at[:n_atoms, :].set(cart)
    nbr_pad = jnp.full((3, col_pad), _PAD_NBR, jnp.float32).at[:, :nm].set(nbr_cart_t)

    d2 = pl.pallas_call(
        _pair_d2_kernel,
        out_shape=jax.ShapeDtypeStruct((row_pad, col_pad), jnp.float32),
        grid=(grid_rows, grid_cols),
        in_specs=[
            pl.BlockSpec((tm, 3), lambda i, j: (i, 0)),
            pl.BlockSpec((3, tn), lambda i, j: (0, j)),
        ],
        out_specs=pl.BlockSpec((tm, tn), lambda i, j: (i, j)),
        compiler_params=pltpu.CompilerParams(
            dimension_semantics=("parallel", "parallel"),
            # 2 x 8 MiB output buffers + lane/sublane-padded input tiles ~= 17 MiB;
            # 40 MiB leaves headroom but stays well inside v7x's 64 MiB per-TC VMEM.
            vmem_limit_bytes=40 * 1024 * 1024,
        ),
    )(cart_pad, nbr_pad)
    return d2


def _lex_ge(a, b):
    """Row-wise lexicographic a >= b for integer arrays of shape [E, 3]."""
    gt = np.zeros(a.shape[0], dtype=bool)
    decided = np.zeros(a.shape[0], dtype=bool)
    for col in range(a.shape[1]):
        gt |= (~decided) & (a[:, col] > b[:, col])
        decided |= a[:, col] != b[:, col]
    return gt | ~decided


class CrystalGraphConverter:
    """JAX/Pallas re-implementation of chgnet's CrystalGraphConverter forward pass.

    Instead of a pymatgen Structure it takes (atomic_number, frac_coords, lattice)
    arrays; the periodic neighbor search runs in the Pallas kernel above.
    """

    def __init__(self, *, atom_graph_cutoff=ATOM_GRAPH_CUTOFF,
                 bond_graph_cutoff=BOND_GRAPH_CUTOFF,
                 on_isolated_atoms="error"):
        self.atom_graph_cutoff = float(atom_graph_cutoff)
        self.bond_graph_cutoff = float(atom_graph_cutoff if bond_graph_cutoff is None
                                       else bond_graph_cutoff)
        self.on_isolated_atoms = on_isolated_atoms
        self.algorithm = "legacy"

    def __repr__(self):
        return (f"CrystalGraphConverter(algorithm={self.algorithm!r}, "
                f"atom_graph_cutoff={self.atom_graph_cutoff!r}, "
                f"bond_graph_cutoff={self.bond_graph_cutoff!r})")

    @staticmethod
    def _periodic_images(lattice_np, cutoff, frac_np):
        """Per-axis image range derived from lattice + cutoff (like get_neighbor_list).

        Widened by the per-axis fractional-coordinate spread so unwrapped frac
        coords (outside [0, 1)) still find all neighbors within the cutoff.
        """
        inv_lat = np.linalg.inv(lattice_np)
        # ||col i of inv(L)|| = 1 / (spacing between lattice planes along axis i)
        recip_len = np.linalg.norm(inv_lat, axis=0)
        spread = np.max(frac_np, axis=0) - np.min(frac_np, axis=0)
        extra = np.maximum(np.ceil(spread) - 1, 0).astype(np.int64)
        bounds = np.maximum(np.ceil(cutoff * recip_len).astype(np.int64) + extra, 1)
        axes = [np.arange(-b, b + 1, dtype=np.int64) for b in bounds]
        grid = np.stack(np.meshgrid(*axes, indexing="ij"), axis=-1).reshape(-1, 3)
        return grid  # int64 [M, 3], contains (0, 0, 0)

    def forward(self, atomic_number, frac_coords, lattice, graph_id=None, mp_id=None):
        n_atoms = int(frac_coords.shape[0])
        lat_np = np.asarray(jax.device_get(lattice), dtype=np.float64)
        frac_np = np.asarray(jax.device_get(frac_coords), dtype=np.float64)

        images_int = self._periodic_images(lat_np, self.atom_graph_cutoff, frac_np)
        n_img = images_int.shape[0]

        # === hot path: Pallas kernel (squared all-pairs periodic distances) ===
        d2 = pair_squared_distances(frac_coords, lattice, images_int.astype(np.float32))

        # === on-device cutoff mask + edge compaction ===
        # Padded rows/cols evaluate to huge d2 and are excluded by the cutoff;
        # only E-length index/distance vectors ever reach the host.
        # NOTE: edge selection is f32 on squared distances (strict < cutoff^2);
        # edges within ~1e-5 A of the cutoff may differ from the float64 reference.
        cutoff2 = jnp.float32(self.atom_graph_cutoff ** 2)
        tol2 = jnp.float32(NUMERICAL_TOL ** 2)
        mask = (d2 > tol2) & (d2 < cutoff2)
        rows, cols = jnp.nonzero(mask)            # eager: dynamic edge count allowed
        dist_dev = jnp.sqrt(d2[rows, cols])       # sqrt only on selected edges

        center_idx = np.asarray(jax.device_get(rows)).astype(np.int64)
        cols_np = np.asarray(jax.device_get(cols)).astype(np.int64)
        distance = np.asarray(jax.device_get(jax.block_until_ready(dist_dev))
                              ).astype(np.float64)
        neighbor_idx = cols_np // n_img
        image = images_int[cols_np % n_img]       # [E, 3] int64

        # Isolated-atom handling (reference: on_isolated_atoms='error').
        n_isolated = n_atoms - len(np.unique(center_idx))
        if n_isolated:
            msg = (f"Structure graph_id={graph_id!r} has {n_isolated} isolated atom(s) "
                   f"with atom_graph_cutoff={self.atom_graph_cutoff!r}.")
            if self.on_isolated_atoms == "error":
                raise ValueError(msg)
            if self.on_isolated_atoms == "warn":
                print(msg)

        # === host glue: directed <-> undirected edge bookkeeping (vectorized) ===
        ci = center_idx
        ni = neighbor_idx
        neg_img = -image
        keep = (ci < ni) | ((ci == ni) & _lex_ge(image, neg_img))
        ki = np.where(keep, ci, ni)
        kj = np.where(keep, ni, ci)
        kimg = np.where(keep[:, None], image, neg_img)
        key_mat = np.concatenate([ki[:, None], kj[:, None], kimg], axis=1)
        if key_mat.shape[0]:
            _, first_idx, inv = np.unique(key_mat, axis=0,
                                          return_index=True, return_inverse=True)
            inv = np.asarray(inv).reshape(-1)
            order = np.argsort(first_idx, kind="stable")      # first-occurrence id order
            rank = np.empty_like(order)
            rank[order] = np.arange(order.shape[0])
            directed2undirected = rank[inv].astype(np.int32)
            undirected2directed = first_idx[order].astype(np.int32)
        else:
            directed2undirected = np.empty((0,), np.int32)
            undirected2directed = np.empty((0,), np.int32)

        atom_graph = np.stack([center_idx, neighbor_idx], axis=1).astype(np.int32)

        # === host glue: bond (line) graph within bond_graph_cutoff (vectorized per center) ===
        # TODO(synk): chgnet's Graph.line_graph_adjacency_list has extra edge-ordering
        # conventions; here we enumerate all ordered pairs of short directed bonds sharing
        # a center atom, excluding pairs belonging to the same undirected bond.
        short = np.nonzero(distance < self.bond_graph_cutoff)[0]
        bond_rows = []
        if short.size:
            c_short = center_idx[short]
            order_s = np.argsort(c_short, kind="stable")
            short_sorted = short[order_s]
            c_sorted = c_short[order_s]
            uniq_c, starts, counts = np.unique(c_sorted, return_index=True,
                                               return_counts=True)
            for a, s, c in zip(uniq_c, starts, counts):
                es = short_sorted[s:s + c]
                e1 = np.repeat(es, c)
                e2 = np.tile(es, c)
                u1 = directed2undirected[e1]
                u2 = directed2undirected[e2]
                m = u1 != u2
                if m.any():
                    rows_b = np.stack([np.full(int(m.sum()), a, dtype=np.int64),
                                       u1[m], e1[m], u2[m], e2[m]], axis=1)
                    bond_rows.append(rows_b)
        bond_graph = (np.concatenate(bond_rows, axis=0).astype(np.int32)
                      if bond_rows else np.empty((0, 5), dtype=np.int32))

        # CrystalGraph fields (as a dict of JAX arrays).
        return {
            "atomic_number": jnp.asarray(atomic_number, dtype=jnp.int32),
            "atom_frac_coord": jnp.asarray(frac_coords, dtype=jnp.float32),
            "atom_graph": jnp.asarray(atom_graph),
            "neighbor_image": jnp.asarray(image, dtype=jnp.float32),
            "directed2undirected": jnp.asarray(directed2undirected),
            "undirected2directed": jnp.asarray(undirected2directed),
            "bond_graph": jnp.asarray(bond_graph),
            "lattice": jnp.asarray(lattice, dtype=jnp.float32),
            "graph_id": graph_id,
            "mp_id": mp_id,
            "atom_graph_cutoff": self.atom_graph_cutoff,
            "bond_graph_cutoff": self.bond_graph_cutoff,
        }


if __name__ == "__main__":
    key = jax.random.PRNGKey(0)
    k1, k2, k3 = jax.random.split(key, 3)

    n_atoms = 8
    frac = jax.random.uniform(k1, (n_atoms, 3), dtype=jnp.float32)
    lattice = (4.0 * jnp.eye(3, dtype=jnp.float32)
               + 0.1 * jax.random.normal(k2, (3, 3), dtype=jnp.float32))
    atomic_number = jax.random.randint(k3, (n_atoms,), 1, 95).astype(jnp.int32)

    converter = CrystalGraphConverter(atom_graph_cutoff=6.0, bond_graph_cutoff=3.0,
                                      on_isolated_atoms="error")
    graph = converter.forward(atomic_number, frac, lattice, graph_id="synthetic-0")
    jax.block_until_ready(graph["atom_frac_coord"])

    # --- structural checks ---
    E = int(graph["atom_graph"].shape[0])
    assert graph["atom_graph"].shape == (E, 2)
    assert graph["neighbor_image"].shape == (E, 3)
    assert graph["directed2undirected"].shape[0] == E
    assert graph["bond_graph"].ndim == 2 and graph["bond_graph"].shape[1] == 5
    d2u = np.asarray(graph["directed2undirected"])
    if E:
        counts = np.bincount(d2u)
        assert counts.min() >= 1 and counts.max() <= 2
        assert int(graph["undirected2directed"].shape[0]) == counts.size

    # --- float64 numpy reference: edge count must land inside a cutoff margin ---
    frac64 = np.asarray(jax.device_get(frac), np.float64)
    lat64 = np.asarray(jax.device_get(lattice), np.float64)
    imgs = CrystalGraphConverter._periodic_images(lat64, 6.0, frac64)
    cart64 = frac64 @ lat64
    nbr64 = cart64[None, :, :] + (imgs.astype(np.float64) @ lat64)[:, None, :]  # [M,N,3]
    dref = np.linalg.norm(nbr64[None, :, :, :] - cart64[:, None, None, :], axis=-1)
    n_lo = int(np.sum((dref > 1e-6) & (dref < 6.0 - 1e-3)))
    n_hi = int(np.sum((dref > 1e-6) & (dref < 6.0 + 1e-3)))
    assert n_lo <= E <= n_hi, (n_lo, E, n_hi)

    print("KERNEL_OK")
</pallas_src>

<mosaic_0001>
module attributes {stable_mosaic.version = 11 : i64} {
  func.func @_pair_d2_kernel(%arg0: i32, %arg1: i32, %arg2: memref<8x3xf32, #tpu.memory_space<vmem>>, %arg3: memref<3x512xf32, #tpu.memory_space<vmem>>, %arg4: memref<8x512xf32, #tpu.memory_space<vmem>>) attributes {dimension_semantics = [#tpu.dimension_semantics<parallel>, #tpu.dimension_semantics<parallel>], iteration_bounds = array<i64: 1, 2>, scalar_prefetch = 0 : i64, scratch_operands = 0 : i64, tpu.core_type = #tpu.core_type<tc>, window_params = [{transform_indices = @transform_0, window_bounds = array<i64: 8, 3>}, {transform_indices = @transform_1, window_bounds = array<i64: 3, 512>}, {transform_indices = @transform_2, window_bounds = array<i64: 8, 512>}]} {
    %c0 = arith.constant 0 : index
    %c0_0 = arith.constant 0 : index
    %0 = vector.load %arg2[%c0, %c0_0] : memref<8x3xf32, #tpu.memory_space<vmem>>, vector<8x3xf32>
    %c0_1 = arith.constant 0 : index
    %c0_2 = arith.constant 0 : index
    %1 = vector.load %arg3[%c0_1, %c0_2] : memref<3x512xf32, #tpu.memory_space<vmem>>, vector<3x512xf32>
    %2 = vector.extract_strided_slice %1 {offsets = [0, 0], sizes = [1, 512], strides = [1, 1]} : vector<3x512xf32> to vector<1x512xf32>
    %3 = vector.extract_strided_slice %0 {offsets = [0, 0], sizes = [8, 1], strides = [1, 1]} : vector<8x3xf32> to vector<8x1xf32>
    %4 = vector.broadcast %2 : vector<1x512xf32> to vector<8x512xf32>
    %5 = vector.broadcast %3 : vector<8x1xf32> to vector<8x512xf32>
    %6 = arith.subf %4, %5 : vector<8x512xf32>
    %7 = vector.extract_strided_slice %1 {offsets = [1, 0], sizes = [1, 512], strides = [1, 1]} : vector<3x512xf32> to vector<1x512xf32>
    %8 = vector.extract_strided_slice %0 {offsets = [0, 1], sizes = [8, 1], strides = [1, 1]} : vector<8x3xf32> to vector<8x1xf32>
    %9 = vector.broadcast %7 : vector<1x512xf32> to vector<8x512xf32>
    %10 = vector.broadcast %8 : vector<8x1xf32> to vector<8x512xf32>
    %11 = arith.subf %9, %10 : vector<8x512xf32>
    %12 = vector.extract_strided_slice %1 {offsets = [2, 0], sizes = [1, 512], strides = [1, 1]} : vector<3x512xf32> to vector<1x512xf32>
    %13 = vector.extract_strided_slice %0 {offsets = [0, 2], sizes = [8, 1], strides = [1, 1]} : vector<8x3xf32> to vector<8x1xf32>
    %14 = vector.broadcast %12 : vector<1x512xf32> to vector<8x512xf32>
    %15 = vector.broadcast %13 : vector<8x1xf32> to vector<8x512xf32>
    %16 = arith.subf %14, %15 : vector<8x512xf32>
    %17 = arith.mulf %6, %6 : vector<8x512xf32>
    %18 = arith.mulf %11, %11 : vector<8x512xf32>
    %19 = arith.addf %17, %18 : vector<8x512xf32>
    %20 = arith.mulf %16, %16 : vector<8x512xf32>
    %21 = arith.addf %19, %20 : vector<8x512xf32>
    %c0_3 = arith.constant 0 : index
    %c0_4 = arith.constant 0 : index
    %22 = vector.load %arg4[%c0_3, %c0_4] : memref<8x512xf32, #tpu.memory_space<vmem>>, vector<8x512xf32>
    tpu.vector_store %arg4[%c0_3, %c0_4], %21 {strides = array<i32>} : memref<8x512xf32, #tpu.memory_space<vmem>>, vector<8x512xf32>,
    return
  }
  func.func @transform_0(%arg0: i32, %arg1: i32) -> (i32, i32) {
    %c0_i32 = arith.constant 0 : i32
    %c0_i32_0 = arith.constant 0 : i32
    return %arg0, %c0_i32 : i32, i32
  }
  func.func @transform_1(%arg0: i32, %arg1: i32) -> (i32, i32) {
    %c0_i32 = arith.constant 0 : i32
    %c0_i32_0 = arith.constant 0 : i32
    return %c0_i32, %arg1 : i32, i32
  }
  func.func @transform_2(%arg0: i32, %arg1: i32) -> (i32, i32) {
    %c0_i32 = arith.constant 0 : i32
    return %arg0, %arg1 : i32, i32
  }
}

</mosaic_0001>

<bundles_post_ra>
// kernel: tpu_custom_call.1
= control target key start
LH: loop header
LB: loop body
LE: loop exit
PB: predicated region body
PF: predicated region fallthrough
CT: control target
= control target key end

     0   :  { %7 = vsyncpa [#allocation3], 0  ;;  %s865_s0 = inlined_call_operand.vmem [shape: f32[8,3], index: 0, kind: input, shape index: {}]   ;;  %s866_s1 = inlined_call_operand.hbm [shape: f32[3,1024], index: 1, kind: input, shape index: {}]   ;;  %s867_s2 = inlined_call_operand.hbm [shape: f32[8,1024], index: 2, kind: output, shape index: {}]  }
   0x1   :  { %9 = vsyncpa [#allocation3 + $0x1], 0 }
   0x2   :  { %10 = vsyncpa [#allocation4], 0 }
   0x3   :  { %12 = vsyncpa [#allocation4 + $0x1], 0  ;;  %s689_s9 = smov 0   ;;  %s691_s10 = smov 0  }
   0x4   :  { %s693_s11 = smov 0   ;;  %s695_s12 = smov 0  }
   0x5   :  { %s697_s13 = smov 0   ;;  %s699_s14 = smov 0  }
   0x6 LB: > { %s468_s15 = sadd.s32 4294967295, %s667_s14   ;;  %s469_s16 = sadd.s32 4294967294, %s667_s14   ;;  %s667_s14 = sphi %s699_s14, %s18_s14   ;;  %s663_s13 = sphi %s697_s13, %s883_s13   ;;  %s659_s12 = sphi %s695_s12, %s882_s12   ;;  %s655_s11 = sphi %s693_s11, %s881_s11   ;;  %s651_s10 = sphi %s691_s10, %s880_s10   ;;  %s647_s9 = sphi %s689_s9, %s879_s9  }
   0x7   : > { %s27_s17 = sadd.s32 1, %s663_s13  ;;  %s63_s18 = sadd.s32 1, %s655_s11 }
   0x8   : > { %p28_p0 = scmp.ge.s32.totalorder %s27_s17, 2  ;;  %p70_p1 = scmp.ne.s32.totalorder %s655_s11, %s651_s10 }
   0x9   : > { %p71_p2 = scmp.eq.s32.totalorder %s667_s14, 0  ;;  %p76_p3 = scmp.ne.s32.totalorder %s651_s10, %s647_s9 }
   0xa   : > { %s885_s17 = smov (%p28_p0, %s27_s17), 0  ;;  %p77_p5 = scmp.eq.s32.totalorder %s468_s15, 0 }
   0xb   : > { %p730_p4 = por %p71_p2, %p70_p1  ;;  %s60_s20 = ssub.s32 %s663_s13, %s885_s17 }
   0xc   : > { %p102_p6 = scmp.eq.s32.totalorder %s468_s15, 1  ;;  %p61_p7 = scmp.eq.s32.totalorder %s60_s20, 0 }
   0xd   : > { %p736_p8 = por %p77_p5, %p76_p3  ;;  %p108_p10 = scmp.eq.s32.totalorder %s469_s16, 1 }
   0xe   : > { %p740_p9 = por %p102_p6, %p70_p1  ;;  %p498_p13 = scmp.lt.s32.totalorder %s667_s14, 2 }
   0xf   : > { %s745_s23 = scalar_select %p61_p7, %s655_s11, %s63_s18  }
  0x10   : > { %s871_s22 = scalar_select %p740_p9, 1, 0 }
  0x11   : > { %p747_p11 = por %p108_p10, %p76_p3  ;;  %s135_s25 = sand.u32 1, %s655_s11  }
  0x12   : > { %s473_s26 = sshll.u32 %s135_s25, 4  ;;  %s484_s27 = sshll.u32 %s663_s13, 8 }
  0x13   : > { %s872_s24 = scalar_select %p747_p11, 1, 0 }
  0x14   : > { %s758_s30 = scalar_lea.hbm %s866_s1, %s484_s27  ;;  %s139_s3 = scalar_lea.vmem [#allocation2], %s473_s26 }
  0x15   : > { %s147_s4 = sshll.u32 %s139_s3, 4  ;;  %p764_p0 = pnand %p498_p13, %p730_p4  ;;  %s760_s4 = int_to_ptr.vmem [resolvable:$true] %s147_s4 }
  0x16   : > { %s136_s6 = scalar_lea.sflag [#allocation3], %s135_s25  ;;  %s555_s7 = scalar_lea.hbm %s758_s30, 256 }
  0x17   : > { %p556_p3 = scmp.ne.s32.totalorder %s758_s30, %s555_s7  ;;  %p557_p5 = pneg %p764_p0 }
  0x18   : > { %s560_s16 = scalar_lea.hbm %s866_s1, 512  ;;  %p561_p4 = scmp.lt.u32.totalorder %s758_s30, %s866_s1 }
  0x19   : > { %p558_p6 = pnand %p557_p5, %p556_p3  ;;  %p562_p10 = scmp.lt.u32.totalorder %s560_s16, %s555_s7 }
  0x1a   : > { %p564_p12 = scmp.lt.u32.totalorder %s555_s7, %s758_s30 }
  0x1b   : > { %p559_p7 = pneg %p558_p6  ;;  %p563_p13 = por %p562_p10, %p561_p4 }
  0x1d   : > { %p565_p1 = por %p564_p12, %p563_p13 }
  0x1f   : > { %p566_p2 = pnand %p565_p1, %p559_p7 }
  0x21   : > { %569 = shalt.err (!%p566_p2)
}
  0x22   : > { %s570_s20 = scalar_lea.vmem %s760_s4, 256  ;;  %s669_s25 = smov [#allocation2]  }
  0x23   : > { %p571_p3 = scmp.ne.s32.totalorder %s760_s4, %s570_s20  ;;  %s575_s26 = sshll.u32 %s669_s25, 4  ;;  %s576_s26 = int_to_ptr.vmem [resolvable:$false] %s575_s26 }
  0x24   : > { %s577_s27 = scalar_lea.vmem %s576_s26, 512  ;;  %p578_p9 = scmp.lt.s32.totalorder %s760_s4, %s576_s26 }
  0x25   : > { %p573_p6 = pnand %p571_p3, %p557_p5  ;;  %p579_p4 = scmp.lt.s32.totalorder %s577_s27, %s570_s20 }
  0x27   : > { %p574_p11 = pneg %p573_p6  ;;  %p580_p10 = por %p579_p4, %p578_p9 }
  0x29   : > { %p581_p12 = pnand %p580_p10, %p574_p11 }
  0x2b   : > { %584 = shalt.err (!%p581_p12)
}
  0x2c   : > { %493 = dma.hbm_to_vmem [thread:$0]  (!%p764_p0), %s758_s30, 256, %s760_s4, %s136_s6  }
  0x2d   : > { %p874_p1 = scmp.lt.s32.totalorder %s667_s14, 3  ;;  %p875_p2 = scmp.ge.s32.totalorder %s667_s14, 1 }
  0x2f   : > { %p153_p5 = pnand %p875_p2, %p874_p1 }
  0x30   : > { %s800_s28 = sand.u32 (!%p153_p5), 1, %s651_s10  }
  0x31   : > { %156 = sbr.rel (%p153_p5) target bundleno = 215 (0xd7), region = 28  ;;  %s477_s29 = sshll.u32 (!%p153_p5), %s800_s28, 4 }
  0x32   : > { %s159_s3 = scalar_lea.sflag (!%p153_p5), [#allocation3], %s800_s28  ;;  %s162_s7 = scalar_lea.vmem (!%p153_p5), [#allocation2], %s477_s29 }
  0x38   : > { %638 = dma.done.wait (%p736_p8), %s159_s3, 256  }
  0x39   : > { %640 = vsyncadd (%p736_p8), %s159_s3, 4294967040  ;;  %v670_v0 = vmov 0   ;;  %v671_v1 = vmov 2   ;;  %v193_v2 = vld [vmem:[%s865_s0] sm:$0xff]  ;;  %v672_v3 = vmov 1   ;;  %v198_v4 = vlaneseq  ;;  %s478_s21 = sshll.u32 %s800_s28, 5 }
  0x3a   : > { %551 = vset.pattern.permute.xlu0 %v670_v0  ;;  %553 = vset.pattern.permute.xlu1 %v671_v1  ;;  %v194_v8 = vld [vmem:[%s162_s7] sm:$0x77]  ;;  %v195_v9 = vld [vmem:[%s162_s7 + $0x8] sm:$0x77]  ;;  %s485_s5 = sshll.u32 %s659_s12, 9  ;;  %s186_s6 = scalar_lea.vmem [#allocation5], %s478_s21 }
  0x3b   : > { %236 = vperm.xlu0 %551, %v193_v2   ;;  %324 = vperm.xlu1 %553, %v193_v2   ;;  %v199_v5 = vshrl.u32 %v198_v4, 7  ;;  %s372_s8 = sshll.u32 %s186_s6, 4  ;;  %s816_s18 = scalar_lea.hbm %s867_s2, %s485_s5  ;;  %s818_s8 = int_to_ptr.vmem [resolvable:$true] %s372_s8 }
  0x3c   : > { %s356_s12 = scalar_lea.sflag [#allocation4], %s800_s28  ;;  %s585_s19 = scalar_lea.vmem %s818_s8, 512 }
  0x3d   : > { %v200_v6 = vsub.s32 0, %v199_v5  ;;  %v204_v7 = vsub.s32 4, %v199_v5  ;;  %v289_v10 = vsub.s32 2, %v199_v5  ;;  %v293_v11 = vsub.s32 6, %v199_v5  ;;  %p586_p8 = scmp.ne.s32.totalorder %s818_s8, %s585_s19  ;;  %p876_p9 = scmp.ne.s32.totalorder %s871_s22, 0 }
  0x3e   : > { %v245_v16 = vsub.s32 1, %v199_v5  ;;  %v249_v17 = vsub.s32 5, %v199_v5  ;;  %s673_s20 = smov [#allocation5]  }
  0x3f   : > { %552 = vset.pattern.permute.xlu0 %v672_v3  ;;  %v201_v12 = vrot.slane %v194_v8, %v200_v6  ;;  %v205_v13 = vrot.slane %v194_v8, %v204_v7  ;;  %v209_v14 = vrot.slane %v195_v9, %v200_v6  ;;  %v213_v15 = vrot.slane %v195_v9, %v204_v7  ;;  %p587_p11 = pnand %p586_p8, %p876_p9  ;;  %s589_s25 = sshll.u32 %s673_s20, 4  ;;  %s590_s25 = int_to_ptr.vmem [resolvable:$false] %s589_s25 }
  0x40   : > { %280 = vperm.xlu0 %552, %v193_v2   ;;  %v290_v18 = vrot.slane %v194_v8, %v289_v10  ;;  %v294_v19 = vrot.slane %v194_v8, %v293_v11  ;;  %v298_v20 = vrot.slane %v195_v9, %v289_v10  ;;  %v302_v21 = vrot.slane %v195_v9, %v293_v11  ;;  %s591_s26 = scalar_lea.vmem %s590_s25, 1024  ;;  %p592_p7 = scmp.lt.s32.totalorder %s818_s8, %s590_s25 }
  0x41   : > { %v221_v22 = vrot.slane %v201_v12, %v200_v6  ;;  %v225_v23 = vrot.slane %v205_v13, %v200_v6  ;;  %v229_v24 = vrot.slane %v209_v14, %v200_v6  ;;  %v233_v25 = vrot.slane %v213_v15, %v200_v6  ;;  %p588_p0 = pneg %p587_p11  ;;  %p593_p13 = scmp.lt.s32.totalorder %s591_s26, %s585_s19 }
  0x42   : > { %v246_v26 = vrot.slane %v194_v8, %v245_v16  ;;  %v250_v27 = vrot.slane %v194_v8, %v249_v17  ;;  %v254_v28 = vrot.slane %v195_v9, %v245_v16  ;;  %v258_v29 = vrot.slane %v195_v9, %v249_v17 }
  0x43   : > { %v310_v30 = vrot.slane %v290_v18, %v289_v10  ;;  %v314_v31 = vrot.slane %v294_v19, %v289_v10  ;;  %v318_v32 = vrot.slane %v298_v20, %v289_v10  ;;  %v322_v33 = vrot.slane %v302_v21, %v289_v10  ;;  %p594_p3 = por %p593_p13, %p592_p7 }
  0x44   : > { %554 = vset.pattern.permute.xlu0 %v671_v1  ;;  %v266_v40 = vrot.slane %v246_v26, %v245_v16  ;;  %v270_v41 = vrot.slane %v250_v27, %v245_v16  ;;  %v274_v42 = vrot.slane %v254_v28, %v245_v16  ;;  %v278_v43 = vrot.slane %v258_v29, %v245_v16 }
  0x45   : > { %p595_p6 = pnand %p594_p3, %p588_p0 }
  0xba   : > { %v237_v34 = vpop.permute.xlu0 %236  ;;  %v325_v35 = vpop.permute.xlu1 %324 }
  0xbb   : > { %v239_v36 = vsub.f32 %v221_v22, %v237_v34  ;;  %v240_v37 = vsub.f32 %v225_v23, %v237_v34  ;;  %v241_v38 = vsub.f32 %v229_v24, %v237_v34  ;;  %v242_v39 = vsub.f32 %v233_v25, %v237_v34 }
  0xbc   : > { %v327_v44 = vsub.f32 %v310_v30, %v325_v35  ;;  %v328_v45 = vsub.f32 %v314_v31, %v325_v35  ;;  %v329_v46 = vsub.f32 %v318_v32, %v325_v35  ;;  %v330_v47 = vsub.f32 %v322_v33, %v325_v35 }
  0xbd   : > { %v331_v48 = vmul.f32 %v239_v36, %v239_v36  ;;  %v332_v49 = vmul.f32 %v240_v37, %v240_v37  ;;  %v333_v50 = vmul.f32 %v241_v38, %v241_v38  ;;  %v334_v51 = vmul.f32 %v242_v39, %v242_v39 }
  0xbe   : > { %v343_v57 = vmul.f32 %v327_v44, %v327_v44  ;;  %v344_v58 = vmul.f32 %v328_v45, %v328_v45  ;;  %v345_v59 = vmul.f32 %v329_v46, %v329_v46  ;;  %v346_v60 = vmul.f32 %v330_v47, %v330_v47 }
  0xbf   : > { %v281_v52 = vpop.permute.xlu0 %280 }
  0xc0   : > { %v283_v53 = vsub.f32 %v266_v40, %v281_v52  ;;  %v284_v54 = vsub.f32 %v270_v41, %v281_v52  ;;  %v285_v55 = vsub.f32 %v274_v42, %v281_v52  ;;  %v286_v56 = vsub.f32 %v278_v43, %v281_v52 }
  0xc2   : > { %v335_v61 = vmul.f32 %v283_v53, %v283_v53  ;;  %v336_v62 = vmul.f32 %v284_v54, %v284_v54  ;;  %v337_v63 = vmul.f32 %v285_v55, %v285_v55  ;;  %v338_v0 = vmul.f32 %v286_v56, %v286_v56 }
  0xc4   : > { %v339_v1 = vadd.f32 %v335_v61, %v331_v48  ;;  %v340_v2 = vadd.f32 %v336_v62, %v332_v49  ;;  %v341_v3 = vadd.f32 %v337_v63, %v333_v50  ;;  %v342_v4 = vadd.f32 %v338_v0, %v334_v51 }
  0xc6   : > { %v347_v5 = vadd.f32 %v343_v57, %v339_v1  ;;  %v348_v6 = vadd.f32 %v344_v58, %v340_v2  ;;  %v349_v7 = vadd.f32 %v345_v59, %v341_v3  ;;  %v350_v8 = vadd.f32 %v346_v60, %v342_v4 }
  0xc8   : > { %351 = vst [vmem:[%s186_s6] sm:$0xff] %v347_v5  ;;  %352 = vst [vmem:[%s186_s6 + $0x8] sm:$0xff] %v348_v6 }
  0xc9   : > { %353 = vst [vmem:[%s186_s6 + $0x10] sm:$0xff] %v349_v7  ;;  %354 = vst [vmem:[%s186_s6 + $0x18] sm:$0xff] %v350_v8 }
  0xca   : > { %598 = shalt.err (!%p595_p6)
}
  0xcb   : > { %s599_s27 = scalar_lea.hbm %s816_s18, 512  ;;  %s603_s3 = scalar_lea.hbm %s867_s2, 1024 }
  0xcc   : > { %p600_p4 = scmp.ne.s32.totalorder %s816_s18, %s599_s27  ;;  %p604_p1 = scmp.lt.u32.totalorder %s816_s18, %s867_s2 }
  0xcd   : > { %p605_p2 = scmp.lt.u32.totalorder %s603_s3, %s599_s27  ;;  %p607_p8 = scmp.lt.u32.totalorder %s599_s27, %s816_s18 }
  0xce   : > { %p601_p10 = pnand %p600_p4, %p876_p9 }
  0xcf   : > { %p606_p5 = por %p605_p2, %p604_p1 }
  0xd0   : > { %p602_p12 = pneg %p601_p10 }
  0xd1   : > { %p608_p11 = por %p607_p8, %p606_p5 }
  0xd3   : > { %p609_p0 = pnand %p608_p11, %p602_p12 }
  0xd5   : > { %612 = shalt.err (!%p609_p0)
}
  0xd6   : > { %488 = dma.vmem_to_hbm [thread:$0]  (%p876_p9), %s818_s8, 512, %s816_s18, %s356_s12  }
  0xd7 PF: > { %s384_s4 = sand.u32 1, %s647_s9   ;;  %p877_p7 = scmp.ne.s32.totalorder %s872_s24, 0 }
  0xd8   : > { %p878_p13 = scmp.ge.s32.totalorder %s667_s14, 2  ;;  %s385_s21 = scalar_lea.sflag [#allocation4], %s384_s4 }
  0xda   : > { %p495_p3 = pnand %p878_p13, %p877_p7 }
  0xdc   : > { %642 = dma.done.wait (!%p495_p3), %s385_s21, 512  }
  0xdd   : > { %644 = vsyncadd (!%p495_p3), %s385_s21, 4294966784  ;;  %s18_s14 = sadd.s32 1, %s667_s14   ;;  %s879_s9 = smov %s651_s10 }
  0xde   : > { %p15_p6 = scmp.ge.s32.totalorder %s18_s14, 4   ;;  %s880_s10 = smov %s655_s11 }
  0xdf   : > { %s881_s11 = smov %s745_s23  ;;  %s882_s12 = smov %s663_s13 }
  0xe0   : > { %s883_s13 = smov %s885_s17  ;;  %17 = sbr.rel (!%p15_p6) target bundleno = 6 (0x6), region = 76 }
  0xe7   :  { %390 = vsyncpa [#allocation3], 1 }
  0xe8   :  { %392 = vsyncpa [#allocation3 + $0x1], 1 }
  0xe9   :  { %393 = vsyncpa [#allocation4], 1 }
  0xea   :  { %395 = vsyncpa [#allocation4 + $0x1], 1 }

</bundles_post_ra>
